<compile_context>
chip_gen: v6e
topology: v6e:2x2x1
jax: 0.10.0
libtpu: 0.0.40
codegen_flags: <defaults>
</compile_context>

<pallas_src>
import jax
import jax.numpy as jnp
from jax.experimental import pallas as pl
from jax.experimental.pallas import tpu as pltpu

KERNEL = 3
STRIDE = 3          # PyTorch MaxPool2d default stride == kernel_size
CEIL_MODE = True
LANE = 128


def _out_dim(size, k, s, ceil_mode):
    if ceil_mode:
        out = -(-(size - k) // s) + 1
        # PyTorch rule: the last window must start inside the input
        if (out - 1) * s >= size:
            out -= 1
        return out
    return (size - k) // s + 1


def _maxpool_kernel(x_ref, o_ref):
    # x_ref: (KH, KW, OH, OW, TBC) in VMEM, channels-last (lane = TBC)
    # o_ref: (OH, OW, TBC)
    acc = x_ref[0, 0]                       # (OH, OW, TBC)
    for kh in range(KERNEL):
        for kw in range(KERNEL):
            if kh == 0 and kw == 0:
                continue
            acc = jnp.maximum(acc, x_ref[kh, kw])   # pure VPU elementwise max
    o_ref[...] = acc


def maxpool2d(x):
    """x: (N, C, H, W) float array. Returns (N, C, OH, OW) like nn.MaxPool2d(3, ceil_mode=True)."""
    N, C, H, W = x.shape
    OH = _out_dim(H, KERNEL, STRIDE, CEIL_MODE)
    OW = _out_dim(W, KERNEL, STRIDE, CEIL_MODE)
    H_pad = (OH - 1) * STRIDE + KERNEL
    W_pad = (OW - 1) * STRIDE + KERNEL
    BC = N * C
    itemsize = jnp.dtype(x.dtype).itemsize

    # --- wrapper-side layout plumbing (no data duplication: stride == kernel) ---
    neg = jnp.asarray(-jnp.inf, dtype=x.dtype)
    xf = x.reshape(BC, H, W)
    xf = jnp.pad(xf, ((0, 0), (0, H_pad - H), (0, W_pad - W)), constant_values=neg)
    xf = xf.reshape(BC, OH, KERNEL, OW, KERNEL)          # split non-overlapping windows
    xf = jnp.transpose(xf, (2, 4, 1, 3, 0))              # (KH, KW, OH, OW, BC) channels-last

    # --- BC tiling: lane-multiple tile, double-buffered blocks under VMEM budget ---
    per_lane_bytes = 2 * (KERNEL * KERNEL + 1) * OH * OW * itemsize  # 2x (in + out) buffers
    budget = 24 * 1024 * 1024                                        # v7x-safe headroom
    tbc = (budget // per_lane_bytes) // LANE * LANE
    tbc = max(LANE, min(tbc, ((BC + LANE - 1) // LANE) * LANE))
    bcp = ((BC + tbc - 1) // tbc) * tbc
    if bcp != BC:
        xf = jnp.pad(xf, ((0, 0), (0, 0), (0, 0), (0, 0), (0, bcp - BC)))

    out = pl.pallas_call(
        _maxpool_kernel,
        out_shape=jax.ShapeDtypeStruct((OH, OW, bcp), x.dtype),
        grid=(bcp // tbc,),
        in_specs=[pl.BlockSpec((KERNEL, KERNEL, OH, OW, tbc),
                               lambda i: (0, 0, 0, 0, i))],
        out_specs=pl.BlockSpec((OH, OW, tbc), lambda i: (0, 0, i)),
        compiler_params=pltpu.CompilerParams(
            dimension_semantics=("parallel",),
            vmem_limit_bytes=40 * 1024 * 1024),
    )(xf)

    out = out[:, :, :BC]                                  # drop lane padding
    return jnp.transpose(out, (2, 0, 1)).reshape(N, C, OH, OW)


if __name__ == "__main__":
    key = jax.random.PRNGKey(0)
    # Mirrors: input = torch.reshape(input, (-1, 1, 5, 5)); use batch=16
    x = jax.random.normal(key, (16 * 1 * 5 * 5,), dtype=jnp.float32)
    x = x.reshape(-1, 1, 5, 5)                            # (16, 1, 5, 5)

    out = maxpool2d(x)
    out = jax.block_until_ready(out)

    # Reference: lax.reduce_window (ceil_mode => pad bottom/right with -inf)
    N, C, H, W = x.shape
    OH = _out_dim(H, KERNEL, STRIDE, CEIL_MODE)
    OW = _out_dim(W, KERNEL, STRIDE, CEIL_MODE)
    pad_h = (OH - 1) * STRIDE + KERNEL - H
    pad_w = (OW - 1) * STRIDE + KERNEL - W
    ref = jax.lax.reduce_window(
        x, -jnp.inf, jax.lax.max,
        window_dimensions=(1, 1, KERNEL, KERNEL),
        window_strides=(1, 1, STRIDE, STRIDE),
        padding=((0, 0), (0, 0), (0, pad_h), (0, pad_w)),
    )
    assert out.shape == (N, C, OH, OW), out.shape
    assert jnp.allclose(out, ref), "mismatch vs reference"
    print("KERNEL_OK")
</pallas_src>

<mosaic_0001>
module attributes {stable_mosaic.version = 11 : i64} {
  func.func @_maxpool_kernel(%arg0: i32, %arg1: memref<3x3x2x2x128xf32, #tpu.memory_space<vmem>>, %arg2: memref<2x2x128xf32, #tpu.memory_space<vmem>>) attributes {dimension_semantics = [#tpu.dimension_semantics<parallel>], iteration_bounds = array<i64: 1>, scalar_prefetch = 0 : i64, scratch_operands = 0 : i64, tpu.core_type = #tpu.core_type<tc>, window_params = [{transform_indices = @transform_0, window_bounds = array<i64: 3, 3, 2, 2, 128>}, {transform_indices = @transform_1, window_bounds = array<i64: 2, 2, 128>}]} {
    %c0 = arith.constant 0 : index
    %c0_0 = arith.constant 0 : index
    %c0_1 = arith.constant 0 : index
    %c0_2 = arith.constant 0 : index
    %c0_3 = arith.constant 0 : index
    %0 = vector.load %arg1[%c0, %c0_0, %c0_1, %c0_2, %c0_3] : memref<3x3x2x2x128xf32, #tpu.memory_space<vmem>>, vector<1x1x2x2x128xf32>
    %1 = vector.shape_cast %0 : vector<1x1x2x2x128xf32> to vector<2x2x128xf32>
    %c0_4 = arith.constant 0 : index
    %c1 = arith.constant 1 : index
    %c0_5 = arith.constant 0 : index
    %c0_6 = arith.constant 0 : index
    %c0_7 = arith.constant 0 : index
    %2 = vector.load %arg1[%c0_4, %c1, %c0_5, %c0_6, %c0_7] : memref<3x3x2x2x128xf32, #tpu.memory_space<vmem>>, vector<1x1x2x2x128xf32>
    %3 = vector.shape_cast %2 : vector<1x1x2x2x128xf32> to vector<2x2x128xf32>
    %4 = arith.maximumf %1, %3 : vector<2x2x128xf32>
    %c0_8 = arith.constant 0 : index
    %c2 = arith.constant 2 : index
    %c0_9 = arith.constant 0 : index
    %c0_10 = arith.constant 0 : index
    %c0_11 = arith.constant 0 : index
    %5 = vector.load %arg1[%c0_8, %c2, %c0_9, %c0_10, %c0_11] : memref<3x3x2x2x128xf32, #tpu.memory_space<vmem>>, vector<1x1x2x2x128xf32>
    %6 = vector.shape_cast %5 : vector<1x1x2x2x128xf32> to vector<2x2x128xf32>
    %7 = arith.maximumf %4, %6 : vector<2x2x128xf32>
    %c1_12 = arith.constant 1 : index
    %c0_13 = arith.constant 0 : index
    %c0_14 = arith.constant 0 : index
    %c0_15 = arith.constant 0 : index
    %c0_16 = arith.constant 0 : index
    %8 = vector.load %arg1[%c1_12, %c0_13, %c0_14, %c0_15, %c0_16] : memref<3x3x2x2x128xf32, #tpu.memory_space<vmem>>, vector<1x1x2x2x128xf32>
    %9 = vector.shape_cast %8 : vector<1x1x2x2x128xf32> to vector<2x2x128xf32>
    %10 = arith.maximumf %7, %9 : vector<2x2x128xf32>
    %c1_17 = arith.constant 1 : index
    %c1_18 = arith.constant 1 : index
    %c0_19 = arith.constant 0 : index
    %c0_20 = arith.constant 0 : index
    %c0_21 = arith.constant 0 : index
    %11 = vector.load %arg1[%c1_17, %c1_18, %c0_19, %c0_20, %c0_21] : memref<3x3x2x2x128xf32, #tpu.memory_space<vmem>>, vector<1x1x2x2x128xf32>
    %12 = vector.shape_cast %11 : vector<1x1x2x2x128xf32> to vector<2x2x128xf32>
    %13 = arith.maximumf %10, %12 : vector<2x2x128xf32>
    %c1_22 = arith.constant 1 : index
    %c2_23 = arith.constant 2 : index
    %c0_24 = arith.constant 0 : index
    %c0_25 = arith.constant 0 : index
    %c0_26 = arith.constant 0 : index
    %14 = vector.load %arg1[%c1_22, %c2_23, %c0_24, %c0_25, %c0_26] : memref<3x3x2x2x128xf32, #tpu.memory_space<vmem>>, vector<1x1x2x2x128xf32>
    %15 = vector.shape_cast %14 : vector<1x1x2x2x128xf32> to vector<2x2x128xf32>
    %16 = arith.maximumf %13, %15 : vector<2x2x128xf32>
    %c2_27 = arith.constant 2 : index
    %c0_28 = arith.constant 0 : index
    %c0_29 = arith.constant 0 : index
    %c0_30 = arith.constant 0 : index
    %c0_31 = arith.constant 0 : index
    %17 = vector.load %arg1[%c2_27, %c0_28, %c0_29, %c0_30, %c0_31] : memref<3x3x2x2x128xf32, #tpu.memory_space<vmem>>, vector<1x1x2x2x128xf32>
    %18 = vector.shape_cast %17 : vector<1x1x2x2x128xf32> to vector<2x2x128xf32>
    %19 = arith.maximumf %16, %18 : vector<2x2x128xf32>
    %c2_32 = arith.constant 2 : index
    %c1_33 = arith.constant 1 : index
    %c0_34 = arith.constant 0 : index
    %c0_35 = arith.constant 0 : index
    %c0_36 = arith.constant 0 : index
    %20 = vector.load %arg1[%c2_32, %c1_33, %c0_34, %c0_35, %c0_36] : memref<3x3x2x2x128xf32, #tpu.memory_space<vmem>>, vector<1x1x2x2x128xf32>
    %21 = vector.shape_cast %20 : vector<1x1x2x2x128xf32> to vector<2x2x128xf32>
    %22 = arith.maximumf %19, %21 : vector<2x2x128xf32>
    %c2_37 = arith.constant 2 : index
    %c2_38 = arith.constant 2 : index
    %c0_39 = arith.constant 0 : index
    %c0_40 = arith.constant 0 : index
    %c0_41 = arith.constant 0 : index
    %23 = vector.load %arg1[%c2_37, %c2_38, %c0_39, %c0_40, %c0_41] : memref<3x3x2x2x128xf32, #tpu.memory_space<vmem>>, vector<1x1x2x2x128xf32>
    %24 = vector.shape_cast %23 : vector<1x1x2x2x128xf32> to vector<2x2x128xf32>
    %25 = arith.maximumf %22, %24 : vector<2x2x128xf32>
    %c0_42 = arith.constant 0 : index
    %c0_43 = arith.constant 0 : index
    %c0_44 = arith.constant 0 : index
    %26 = vector.load %arg2[%c0_42, %c0_43, %c0_44] : memref<2x2x128xf32, #tpu.memory_space<vmem>>, vector<2x2x128xf32>
    tpu.vector_store %arg2[%c0_42, %c0_43, %c0_44], %25 {strides = array<i32>} : memref<2x2x128xf32, #tpu.memory_space<vmem>>, vector<2x2x128xf32>,
    return
  }
  func.func @transform_0(%arg0: i32) -> (i32, i32, i32, i32, i32) {
    %c0_i32 = arith.constant 0 : i32
    %c0_i32_0 = arith.constant 0 : i32
    %c0_i32_1 = arith.constant 0 : i32
    %c0_i32_2 = arith.constant 0 : i32
    %c0_i32_3 = arith.constant 0 : i32
    return %c0_i32, %c0_i32_0, %c0_i32_1, %c0_i32_2, %arg0 : i32, i32, i32, i32, i32
  }
  func.func @transform_1(%arg0: i32) -> (i32, i32, i32) {
    %c0_i32 = arith.constant 0 : i32
    %c0_i32_0 = arith.constant 0 : i32
    %c0_i32_1 = arith.constant 0 : i32
    return %c0_i32, %c0_i32_0, %arg0 : i32, i32, i32
  }
}

</mosaic_0001>

<bundles_post_ra>
// kernel: tpu_custom_call.1
= control target key start
LH: loop header
LB: loop body
LE: loop exit
PB: predicated region body
PF: predicated region fallthrough
CT: control target
= control target key end

     0   :  { %6 = vsyncpa [#allocation3], 0  ;;  %s158_s0 = inlined_call_operand.hbm [shape: f32[3,3,2,2,128], index: 0, kind: input, shape index: {}]   ;;  %s159_s1 = inlined_call_operand.hbm [shape: f32[2,2,128], index: 1, kind: output, shape index: {}]  }
   0x1   :  { %7 = vsyncpa [#allocation4], 0  ;;  %s132_s6 = smov [#allocation2]  }
   0x2   :  { %s13_s7 = sshll.u32 %s132_s6, 4  ;;  %s14_s7 = int_to_ptr.vmem [resolvable:$true] %s13_s7 }
   0x3   :  { %s96_s8 = scalar_lea.vmem %s14_s7, 576  ;;  %p101_p1 = scmp.lt.s32.totalorder %s14_s7, %s14_s7 }
   0x4   :  { %p97_p0 = scmp.ne.s32.totalorder %s14_s7, %s96_s8  ;;  %p102_p2 = scmp.lt.s32.totalorder %s96_s8, %s96_s8 }
   0x6   :  { %p103_p3 = por %p102_p2, %p101_p1 }
   0x8   :  { %p104_p4 = pnand %p103_p3, %p97_p0 }
   0xa   :  { %107 = shalt.err (!%p104_p4)
}
   0xb   :  { %s133_s9 = smov 32   ;;  %s134_s10 = smov 2  }
   0xc   :  { %19 = dma.hbm_to_vmem [thread:$0]  %s158_s0, 576, %s14_s7, [#allocation3], %s133_s9, %s133_s9, %s134_s10  }
   0xd   :  { %128 = dma.done.wait [#allocation3], 576  }
   0xe   :  { %129 = vsyncadd [#allocation3], 4294966720  ;;  %v23_v0 = vld [vmem:[#allocation2] sm:$0x3]  ;;  %v26_v1 = vld [vmem:[#allocation2 + $0x4] sm:$0x3] }
   0xf   :  { %v31_v2 = vld [vmem:[#allocation2 + $0x8] sm:$0x3]  ;;  %v28_v3 = vmax.f32 %v23_v0, %v26_v1  ;;  %v36_v4 = vld [vmem:[#allocation2 + $0xc] sm:$0x3]  ;;  %v24_v6 = vld [vmem:[#allocation2 + $0x2] sm:$0x3] }
  0x10   :  { %v27_v7 = vld [vmem:[#allocation2 + $0x6] sm:$0x3]  ;;  %v32_v8 = vld [vmem:[#allocation2 + $0xa] sm:$0x3]  ;;  %v41_v9 = vld [vmem:[#allocation2 + $0x10] sm:$0x3] }
  0x11   :  { %v33_v5 = vmax.f32 %v28_v3, %v31_v2  ;;  %v29_v10 = vmax.f32 %v24_v6, %v27_v7  ;;  %v37_v12 = vld [vmem:[#allocation2 + $0xe] sm:$0x3]  ;;  %v46_v13 = vld [vmem:[#allocation2 + $0x14] sm:$0x3]  ;;  %v42_v16 = vld [vmem:[#allocation2 + $0x12] sm:$0x3] }
  0x12   :  { %v51_v17 = vld [vmem:[#allocation2 + $0x18] sm:$0x3]  ;;  %v47_v20 = vld [vmem:[#allocation2 + $0x16] sm:$0x3]  ;;  %v56_v21 = vld [vmem:[#allocation2 + $0x1c] sm:$0x3] }
  0x13   :  { %v38_v11 = vmax.f32 %v33_v5, %v36_v4  ;;  %v34_v14 = vmax.f32 %v29_v10, %v32_v8  ;;  %v52_v24 = vld [vmem:[#allocation2 + $0x1a] sm:$0x3]  ;;  %v61_v25 = vld [vmem:[#allocation2 + $0x20] sm:$0x3]  ;;  %v57_v28 = vld [vmem:[#allocation2 + $0x1e] sm:$0x3] }
  0x14   :  { %v62_v31 = vld [vmem:[#allocation2 + $0x22] sm:$0x3]  ;;  %s135_s0 = smov [#allocation5]  }
  0x15   :  { %v43_v15 = vmax.f32 %v38_v11, %v41_v9  ;;  %v39_v18 = vmax.f32 %v34_v14, %v37_v12  ;;  %s72_s13 = sshll.u32 %s135_s0, 4  ;;  %s73_s13 = int_to_ptr.vmem [resolvable:$true] %s72_s13 }
  0x16   :  { %s108_s14 = scalar_lea.vmem %s73_s13, 64  ;;  %p113_p6 = scmp.lt.s32.totalorder %s73_s13, %s73_s13 }
  0x17   :  { %v48_v19 = vmax.f32 %v43_v15, %v46_v13  ;;  %v44_v22 = vmax.f32 %v39_v18, %v42_v16  ;;  %p109_p5 = scmp.ne.s32.totalorder %s73_s13, %s108_s14  ;;  %p114_p7 = scmp.lt.s32.totalorder %s108_s14, %s108_s14 }
  0x19   :  { %v53_v23 = vmax.f32 %v48_v19, %v51_v17  ;;  %v49_v26 = vmax.f32 %v44_v22, %v47_v20  ;;  %p115_p8 = por %p114_p7, %p113_p6 }
  0x1b   :  { %v58_v27 = vmax.f32 %v53_v23, %v56_v21  ;;  %v54_v29 = vmax.f32 %v49_v26, %v52_v24  ;;  %p116_p9 = pnand %p115_p8, %p109_p5 }
  0x1d   :  { %v63_v30 = vmax.f32 %v58_v27, %v61_v25  ;;  %v59_v32 = vmax.f32 %v54_v29, %v57_v28 }
  0x1f   :  { %65 = vst [vmem:[#allocation5] sm:$0x3] %v63_v30  ;;  %v64_v33 = vmax.f32 %v59_v32, %v62_v31 }
  0x21   :  { %66 = vst [vmem:[#allocation5 + $0x2] sm:$0x3] %v64_v33 }
  0x22   :  { %119 = shalt.err (!%p116_p9)
}
  0x23   :  { %78 = dma.vmem_to_hbm [thread:$0]  %s73_s13, 64, %s159_s1, [#allocation4], %s133_s9, %s133_s9, %s134_s10  }
  0x24   :  { %130 = dma.done.wait [#allocation4], 64  }
  0x25   :  { %131 = vsyncadd [#allocation4], 4294967232 }
  0x26   :  { %82 = vsyncpa [#allocation3], 1 }
  0x27   :  { %83 = vsyncpa [#allocation4], 1 }

</bundles_post_ra>
